<compile_context>
chip_gen: v5e
topology: v5e:2x2
jax: 0.10.0
libtpu: 0.0.40
codegen_flags: <defaults>
</compile_context>

<pallas_src>
import math
import functools
import numpy as np

import jax
import jax.numpy as jnp
from jax.experimental import pallas as pl
from jax.experimental.pallas import tpu as pltpu

LN_EPS = 1e-5


def _layernorm(x, gamma, beta):
    mean = jnp.mean(x, axis=-1, keepdims=True)
    var = jnp.mean((x - mean) ** 2, axis=-1, keepdims=True)
    return (x - mean) * jax.lax.rsqrt(var + LN_EPS) * gamma + beta


# -----------------------------------------------------------------------------
# Fused kernel: one grid step = the whole L-layer stack applied to Bt batch
# rows.  All weights are VMEM-resident (constant block index -> single DMA).
# -----------------------------------------------------------------------------
def _model_kernel(x_ref, pe_ref, gin_ref, bin_ref, mask0_ref, ind_ref, indt_ref,
                  wq_ref, bq_ref, wk_ref, bk_ref, wv_ref, bv_ref, wo_ref, bo_ref,
                  g1_ref, be1_ref, w1_ref, b1_ref, w2_ref, b2_ref,
                  g2_ref, be2_ref, o_ref):
    Bt, S, D = x_ref.shape
    H = ind_ref.shape[1]
    M = Bt * S
    n_layers = wq_ref.shape[0]

    # Prolog: input LayerNorm + batch-indexed positional encoding (quirk:
    # pe block is (Bt, 1, D) -> P[b] added to every sequence position of b).
    x = _layernorm(x_ref[...], gin_ref[...], bin_ref[...]) + pe_ref[...]     # (Bt,S,D)

    mask0 = mask0_ref[...]        # (1, S, 1) additive mask, row 0 only
    ind = ind_ref[...]            # (D, H) head-block indicator (host constant)
    ind_t = indt_ref[...]         # (H, D)

    def layer(li, x):
        x2 = x.reshape(M, D)      # fold batch rows into the matmul M dimension

        # ---- self-attention: only query position 0 is ever used -------------
        # (reference: x = attn_output[0], broadcast over S by the residual add)
        q0 = jnp.dot(x[:, 0, :], wq_ref[li],
                     preferred_element_type=jnp.float32) + bq_ref[li]        # (Bt,D), pre-scaled
        k2 = jnp.dot(x2, wk_ref[li],
                     preferred_element_type=jnp.float32) + bk_ref[li]        # (M,D)
        v2 = jnp.dot(x2, wv_ref[li],
                     preferred_element_type=jnp.float32) + bv_ref[li]        # (M,D)

        # scores[b, s, h] = <q0_{b,h}, k_{b,s,h}>   (1/sqrt(dh) folded into Wq/bq)
        kq = (k2.reshape(Bt, S, D) * q0[:, None, :]).reshape(M, D)
        s = jnp.dot(kq, ind,
                    preferred_element_type=jnp.float32).reshape(Bt, S, H) + mask0
        m = jnp.max(s, axis=1, keepdims=True)                                # (Bt,1,H)
        p = jnp.exp(s - m)                                                   # unnormalized
        denom = jnp.sum(p, axis=1)                                           # (Bt,H)

        # row-0 attention output for all heads, normalization deferred
        pv = (jnp.dot(p.reshape(M, H), ind_t,
                      preferred_element_type=jnp.float32).reshape(Bt, S, D)
              * v2.reshape(Bt, S, D))
        attn0 = jnp.sum(pv, axis=1)                                          # (Bt,D)
        # exact reciprocal keeps the 1e-4 check tight; approx=True routes to EUP
        inv = pl.reciprocal(jnp.dot(denom, ind_t,
                                    preferred_element_type=jnp.float32),
                            approx=False)                                    # (Bt,D)
        sa = jnp.dot(attn0 * inv, wo_ref[li],
                     preferred_element_type=jnp.float32) + bo_ref[li]        # (Bt,D)

        # residual (broadcast over S, reproducing `attn_output[0]`) + post-norm
        y = _layernorm(x + sa[:, None, :], g1_ref[li], be1_ref[li])          # (Bt,S,D)

        # ---- feed-forward (ReLU; dropouts are identity) ----------------------
        y2 = y.reshape(M, D)
        h = jnp.maximum(jnp.dot(y2, w1_ref[li],
                                preferred_element_type=jnp.float32) + b1_ref[li], 0.0)
        ff = jnp.dot(h, w2_ref[li],
                     preferred_element_type=jnp.float32) + b2_ref[li]        # (M,D)
        return _layernorm(y + ff.reshape(Bt, S, D), g2_ref[li], be2_ref[li])

    o_ref[...] = jax.lax.fori_loop(0, n_layers, layer, x)


# -----------------------------------------------------------------------------
# Wrapper
# -----------------------------------------------------------------------------
def custom_transformer_encoder(tgt_sbd, params, nhead, batch_block=None):
    S, B, D = tgt_sbd.shape
    layers = params["layers"]
    L = len(layers)
    F_ = layers[0]["w1"].shape[1]
    dh = D // nhead
    scale = 1.0 / math.sqrt(dh)

    # Batch tile: target Bt*S >= ~256 MXU rows, but keep Bt a divisor of B so
    # there are no padded edge blocks.
    if batch_block is None:
        batch_block = min(B, max(1, 256 // max(S, 1)))
    batch_block = max(1, min(batch_block, B))
    while B % batch_block != 0:
        batch_block -= 1
    grid_b = B // batch_block

    # (S,B,D) -> (B,S,D): per-tile blocks then expose full (S,D) trailing dims
    # and a (Bt*S, D) M dimension for the matmuls (single layout op each way).
    x = jnp.transpose(tgt_sbd, (1, 0, 2))

    # PositionalEncoding quirk: table indexed by the *batch* position; P[b] is
    # added to every sequence position of batch element b.  (Assumes B <= table
    # length, same silent truncation as the reference.)
    pe = params["pe"][:B][:, None, :]                               # (B, 1, D)

    # Only attention row 0 is ever used -> ship just mask[0], shaped (1, S, 1).
    mask0 = params["mask"][0].reshape(1, S, 1)

    # Head-block indicator matrices, hoisted to host constants.
    ind_np = np.zeros((D, nhead), np.float32)
    for h in range(nhead):
        ind_np[h * dh:(h + 1) * dh, h] = 1.0
    ind = jnp.asarray(ind_np)                                       # (D, H)
    ind_t = jnp.asarray(np.ascontiguousarray(ind_np.T))             # (H, D)

    def stk(name):
        return jnp.stack([lp[name] for lp in layers], axis=0)

    # Fold the query scale into Wq/bq.
    wq, bq = stk("wq") * scale, stk("bq") * scale                   # (L,D,D), (L,1,D)
    stacked = [wq, bq, stk("wk"), stk("bk"), stk("wv"), stk("bv"),
               stk("wo"), stk("bo"), stk("g1"), stk("be1"),
               stk("w1"), stk("b1"), stk("w2"), stk("b2"),
               stk("g2"), stk("be2")]

    # Constant block index -> each of these arrays is DMA'd into VMEM exactly once.
    def const_spec(a):
        nd = a.ndim
        return pl.BlockSpec(a.shape, lambda b, _nd=nd: (0,) * _nd)

    in_specs = [
        pl.BlockSpec((batch_block, S, D), lambda b: (b, 0, 0)),     # x (batch tile)
        pl.BlockSpec((batch_block, 1, D), lambda b: (b, 0, 0)),     # pe (batch-indexed)
        const_spec(params["g_in"]),
        const_spec(params["b_in"]),
        const_spec(mask0),
        const_spec(ind),
        const_spec(ind_t),
    ] + [const_spec(a) for a in stacked]

    # Explicit VMEM budget: resident weights + activation tiles with headroom;
    # floor 32 MiB (above v5e's 16 MiB default), cap 48 MiB (fits v7x's 64 MiB).
    param_bytes = sum(int(np.prod(a.shape)) * 4 for a in stacked)
    act_bytes = batch_block * S * max(D, F_) * 4
    vmem_limit = int(min(max(32 << 20, 4 * param_bytes + 16 * act_bytes), 48 << 20))

    flops = 2 * B * L * (2 * S * D * D + 2 * D * D + 2 * S * D * F_ + 2 * S * D)
    cost = pl.CostEstimate(
        flops=int(flops),
        transcendentals=int(B * L * S * nhead),
        bytes_accessed=int(param_bytes + 2 * B * S * D * 4 + B * D * 4))

    out = pl.pallas_call(
        _model_kernel,
        out_shape=jax.ShapeDtypeStruct((B, S, D), jnp.float32),
        grid=(grid_b,),
        in_specs=in_specs,
        out_specs=pl.BlockSpec((batch_block, S, D), lambda b: (b, 0, 0)),
        compiler_params=pltpu.CompilerParams(
            dimension_semantics=("parallel",),
            vmem_limit_bytes=vmem_limit),
        cost_estimate=cost,
    )(x, pe, params["g_in"], params["b_in"], mask0, ind, ind_t, *stacked)

    return jnp.transpose(out, (1, 0, 2))                            # back to (S, B, D)


# -----------------------------------------------------------------------------
# Pure-JAX reference with the original (unoptimized) math, used as self-check.
# -----------------------------------------------------------------------------
def _reference_forward(tgt_sbd, params, nhead):
    S, B, D = tgt_sbd.shape
    dh = D // nhead
    x = jnp.transpose(tgt_sbd, (1, 0, 2))                           # (B, S, D)
    x = _layernorm(x, params["g_in"], params["b_in"]) + params["pe"][:B][:, None, :]
    mask = params["mask"]
    for lp in params["layers"]:
        q = x @ lp["wq"] + lp["bq"]
        k = x @ lp["wk"] + lp["bk"]
        v = x @ lp["wv"] + lp["bv"]
        outs = []
        for h in range(nhead):
            sl = slice(h * dh, (h + 1) * dh)
            s = (q[..., sl] / math.sqrt(dh)) @ jnp.swapaxes(k[..., sl], -1, -2) + mask
            p = jax.nn.softmax(s, axis=-1)
            outs.append(p @ v[..., sl])
        attn = jnp.concatenate(outs, axis=-1) @ lp["wo"] + lp["bo"]
        sa = attn[:, 0:1, :]                                        # attn_output[0] quirk
        y = _layernorm(x + sa, lp["g1"], lp["be1"])
        ff = jnp.maximum(y @ lp["w1"] + lp["b1"], 0.0) @ lp["w2"] + lp["b2"]
        x = _layernorm(y + ff, lp["g2"], lp["be2"])
    return jnp.transpose(x, (1, 0, 2))


# -----------------------------------------------------------------------------
# Deterministic parameter construction (synthetic, no checkpoint).
# -----------------------------------------------------------------------------
def init_params(key, d_model, dim_ff, n_layers, seq_length):
    D, F_ = d_model, dim_ff

    pos = np.arange(seq_length, dtype=np.float32).reshape(-1, 1)
    div = np.power(10000.0, np.arange(0, D, 2, dtype=np.float32) / D)
    P = np.zeros((seq_length, D), dtype=np.float32)
    P[:, 0::2] = np.sin(pos / div)
    P[:, 1::2] = np.cos(pos / div)

    # Causal additive mask (row 0 has at least one finite entry -> no NaN softmax).
    tril = np.tril(np.ones((seq_length, seq_length), dtype=np.float32))
    mask = np.where(tril == 1.0, 0.0, -np.inf).astype(np.float32)

    def init_layer(k):
        ks = jax.random.split(k, 10)
        sD, sF = 1.0 / math.sqrt(D), 1.0 / math.sqrt(F_)
        return dict(
            wq=jax.random.normal(ks[0], (D, D), jnp.float32) * sD,
            wk=jax.random.normal(ks[1], (D, D), jnp.float32) * sD,
            wv=jax.random.normal(ks[2], (D, D), jnp.float32) * sD,
            bq=jax.random.normal(ks[3], (1, D), jnp.float32) * 0.01,
            bk=jax.random.normal(ks[4], (1, D), jnp.float32) * 0.01,
            bv=jax.random.normal(ks[5], (1, D), jnp.float32) * 0.01,
            wo=jax.random.normal(ks[6], (D, D), jnp.float32) * sD,
            bo=jnp.zeros((1, D), jnp.float32),
            g1=jnp.ones((1, D), jnp.float32),
            be1=jnp.zeros((1, D), jnp.float32),
            w1=jax.random.normal(ks[7], (D, F_), jnp.float32) * sD,
            b1=jax.random.normal(ks[8], (1, F_), jnp.float32) * 0.01,
            w2=jax.random.normal(ks[9], (F_, D), jnp.float32) * sF,
            b2=jnp.zeros((1, D), jnp.float32),
            g2=jnp.ones((1, D), jnp.float32),
            be2=jnp.zeros((1, D), jnp.float32),
        )

    keys = jax.random.split(key, n_layers)
    return dict(
        g_in=jnp.ones((1, D), jnp.float32),
        b_in=jnp.zeros((1, D), jnp.float32),
        pe=jnp.asarray(P),
        mask=jnp.asarray(mask),
        layers=[init_layer(k) for k in keys],
    )


if __name__ == "__main__":
    # small shapes consistent with the module
    S, B, D, H, F_, L = 8, 2, 32, 4, 64, 3

    key = jax.random.PRNGKey(0)
    k_x, k_p = jax.random.split(key)
    tgt = jax.random.normal(k_x, (S, B, D), jnp.float32)   # (seq, batch, d_model)
    params = init_params(k_p, d_model=D, dim_ff=F_, n_layers=L, seq_length=S)

    fwd = jax.jit(functools.partial(custom_transformer_encoder, nhead=H))
    out = jax.block_until_ready(fwd(tgt, params))

    assert out.shape == (S, B, D)
    assert bool(jnp.all(jnp.isfinite(out)))

    ref = _reference_forward(tgt, params, nhead=H)
    np.testing.assert_allclose(np.asarray(out), np.asarray(ref), atol=1e-4, rtol=1e-4)

    print("KERNEL_OK")
</pallas_src>

<mosaic_0001>
module attributes {stable_mosaic.version = 11 : i64} {
  func.func @_model_kernel(%arg0: i32, %arg1: memref<2x8x32xf32, #tpu.memory_space<vmem>>, %arg2: memref<2x1x32xf32, #tpu.memory_space<vmem>>, %arg3: memref<1x32xf32, #tpu.memory_space<vmem>>, %arg4: memref<1x32xf32, #tpu.memory_space<vmem>>, %arg5: memref<1x8x1xf32, #tpu.memory_space<vmem>>, %arg6: memref<32x4xf32, #tpu.memory_space<vmem>>, %arg7: memref<4x32xf32, #tpu.memory_space<vmem>>, %arg8: memref<3x32x32xf32, #tpu.memory_space<vmem>>, %arg9: memref<3x1x32xf32, #tpu.memory_space<vmem>>, %arg10: memref<3x32x32xf32, #tpu.memory_space<vmem>>, %arg11: memref<3x1x32xf32, #tpu.memory_space<vmem>>, %arg12: memref<3x32x32xf32, #tpu.memory_space<vmem>>, %arg13: memref<3x1x32xf32, #tpu.memory_space<vmem>>, %arg14: memref<3x32x32xf32, #tpu.memory_space<vmem>>, %arg15: memref<3x1x32xf32, #tpu.memory_space<vmem>>, %arg16: memref<3x1x32xf32, #tpu.memory_space<vmem>>, %arg17: memref<3x1x32xf32, #tpu.memory_space<vmem>>, %arg18: memref<3x32x64xf32, #tpu.memory_space<vmem>>, %arg19: memref<3x1x64xf32, #tpu.memory_space<vmem>>, %arg20: memref<3x64x32xf32, #tpu.memory_space<vmem>>, %arg21: memref<3x1x32xf32, #tpu.memory_space<vmem>>, %arg22: memref<3x1x32xf32, #tpu.memory_space<vmem>>, %arg23: memref<3x1x32xf32, #tpu.memory_space<vmem>>, %arg24: memref<2x8x32xf32, #tpu.memory_space<vmem>>) attributes {dimension_semantics = [#tpu.dimension_semantics<parallel>], iteration_bounds = array<i64: 1>, scalar_prefetch = 0 : i64, scratch_operands = 0 : i64, tpu.core_type = #tpu.core_type<tc>, window_params = [{transform_indices = @transform_0, window_bounds = array<i64: 2, 8, 32>}, {transform_indices = @transform_1, window_bounds = array<i64: 2, 1, 32>}, {pipeline_mode = #tpu.pipeline_mode<synchronous>, transform_indices = @transform_2, window_bounds = array<i64: 1, 32>}, {pipeline_mode = #tpu.pipeline_mode<synchronous>, transform_indices = @transform_3, window_bounds = array<i64: 1, 32>}, {pipeline_mode = #tpu.pipeline_mode<synchronous>, transform_indices = @transform_4, window_bounds = array<i64: 1, 8, 1>}, {pipeline_mode = #tpu.pipeline_mode<synchronous>, transform_indices = @transform_5, window_bounds = array<i64: 32, 4>}, {pipeline_mode = #tpu.pipeline_mode<synchronous>, transform_indices = @transform_6, window_bounds = array<i64: 4, 32>}, {pipeline_mode = #tpu.pipeline_mode<synchronous>, transform_indices = @transform_7, window_bounds = array<i64: 3, 32, 32>}, {pipeline_mode = #tpu.pipeline_mode<synchronous>, transform_indices = @transform_8, window_bounds = array<i64: 3, 1, 32>}, {pipeline_mode = #tpu.pipeline_mode<synchronous>, transform_indices = @transform_9, window_bounds = array<i64: 3, 32, 32>}, {pipeline_mode = #tpu.pipeline_mode<synchronous>, transform_indices = @transform_10, window_bounds = array<i64: 3, 1, 32>}, {pipeline_mode = #tpu.pipeline_mode<synchronous>, transform_indices = @transform_11, window_bounds = array<i64: 3, 32, 32>}, {pipeline_mode = #tpu.pipeline_mode<synchronous>, transform_indices = @transform_12, window_bounds = array<i64: 3, 1, 32>}, {pipeline_mode = #tpu.pipeline_mode<synchronous>, transform_indices = @transform_13, window_bounds = array<i64: 3, 32, 32>}, {pipeline_mode = #tpu.pipeline_mode<synchronous>, transform_indices = @transform_14, window_bounds = array<i64: 3, 1, 32>}, {pipeline_mode = #tpu.pipeline_mode<synchronous>, transform_indices = @transform_15, window_bounds = array<i64: 3, 1, 32>}, {pipeline_mode = #tpu.pipeline_mode<synchronous>, transform_indices = @transform_16, window_bounds = array<i64: 3, 1, 32>}, {pipeline_mode = #tpu.pipeline_mode<synchronous>, transform_indices = @transform_17, window_bounds = array<i64: 3, 32, 64>}, {pipeline_mode = #tpu.pipeline_mode<synchronous>, transform_indices = @transform_18, window_bounds = array<i64: 3, 1, 64>}, {pipeline_mode = #tpu.pipeline_mode<synchronous>, transform_indices = @transform_19, window_bounds = array<i64: 3, 64, 32>}, {pipeline_mode = #tpu.pipeline_mode<synchronous>, transform_indices = @transform_20, window_bounds = array<i64: 3, 1, 32>}, {pipeline_mode = #tpu.pipeline_mode<synchronous>, transform_indices = @transform_21, window_bounds = array<i64: 3, 1, 32>}, {pipeline_mode = #tpu.pipeline_mode<synchronous>, transform_indices = @transform_22, window_bounds = array<i64: 3, 1, 32>}, {transform_indices = @transform_23, window_bounds = array<i64: 2, 8, 32>}]} {
    %c0 = arith.constant 0 : index
    %c0_0 = arith.constant 0 : index
    %c0_1 = arith.constant 0 : index
    %0 = vector.load %arg1[%c0, %c0_0, %c0_1] : memref<2x8x32xf32, #tpu.memory_space<vmem>>, vector<2x8x32xf32>
    %c0_2 = arith.constant 0 : index
    %c0_3 = arith.constant 0 : index
    %1 = vector.load %arg3[%c0_2, %c0_3] : memref<1x32xf32, #tpu.memory_space<vmem>>, vector<1x32xf32>
    %c0_4 = arith.constant 0 : index
    %c0_5 = arith.constant 0 : index
    %2 = vector.load %arg4[%c0_4, %c0_5] : memref<1x32xf32, #tpu.memory_space<vmem>>, vector<1x32xf32>
    %cst = arith.constant dense<0.000000e+00> : vector<2x8xf32>
    %3 = vector.multi_reduction <add>, %0, %cst [2] : vector<2x8x32xf32> to vector<2x8xf32>
    %4 = vector.shape_cast %3 : vector<2x8xf32> to vector<2x8x1xf32>
    %cst_6 = arith.constant 3.200000e+01 : f32
    %5 = vector.broadcast %cst_6 : f32 to vector<2x8x1xf32>
    %6 = arith.divf %4, %5 : vector<2x8x1xf32>
    %7 = vector.broadcast %6 : vector<2x8x1xf32> to vector<2x8x32xf32>
    %8 = arith.subf %0, %7 : vector<2x8x32xf32>
    %9 = arith.mulf %8, %8 : vector<2x8x32xf32>
    %cst_7 = arith.constant dense<0.000000e+00> : vector<2x8xf32>
    %10 = vector.multi_reduction <add>, %9, %cst_7 [2] : vector<2x8x32xf32> to vector<2x8xf32>
    %11 = vector.shape_cast %10 : vector<2x8xf32> to vector<2x8x1xf32>
    %cst_8 = arith.constant 3.200000e+01 : f32
    %12 = vector.broadcast %cst_8 : f32 to vector<2x8x1xf32>
    %13 = arith.divf %11, %12 : vector<2x8x1xf32>
    %14 = vector.broadcast %6 : vector<2x8x1xf32> to vector<2x8x32xf32>
    %15 = arith.subf %0, %14 : vector<2x8x32xf32>
    %cst_9 = arith.constant 9.99999974E-6 : f32
    %16 = vector.broadcast %cst_9 : f32 to vector<2x8x1xf32>
    %17 = arith.addf %13, %16 : vector<2x8x1xf32>
    %18 = math.rsqrt %17 : vector<2x8x1xf32>
    %19 = vector.broadcast %18 : vector<2x8x1xf32> to vector<2x8x32xf32>
    %20 = arith.mulf %15, %19 : vector<2x8x32xf32>
    %21 = vector.shape_cast %1 : vector<1x32xf32> to vector<1x1x32xf32>
    %22 = vector.broadcast %21 : vector<1x1x32xf32> to vector<2x8x32xf32>
    %23 = arith.mulf %20, %22 : vector<2x8x32xf32>
    %24 = vector.shape_cast %2 : vector<1x32xf32> to vector<1x1x32xf32>
    %25 = vector.broadcast %24 : vector<1x1x32xf32> to vector<2x8x32xf32>
    %26 = arith.addf %23, %25 : vector<2x8x32xf32>
    %c0_10 = arith.constant 0 : index
    %c0_11 = arith.constant 0 : index
    %c0_12 = arith.constant 0 : index
    %27 = vector.load %arg2[%c0_10, %c0_11, %c0_12] : memref<2x1x32xf32, #tpu.memory_space<vmem>>, vector<2x1x32xf32>
    %28 = vector.broadcast %27 : vector<2x1x32xf32> to vector<2x8x32xf32>
    %29 = arith.addf %26, %28 : vector<2x8x32xf32>
    %c0_13 = arith.constant 0 : index
    %c0_14 = arith.constant 0 : index
    %c0_15 = arith.constant 0 : index
    %30 = vector.load %arg5[%c0_13, %c0_14, %c0_15] : memref<1x8x1xf32, #tpu.memory_space<vmem>>, vector<1x8x1xf32>
    %c0_16 = arith.constant 0 : index
    %c0_17 = arith.constant 0 : index
    %31 = vector.load %arg6[%c0_16, %c0_17] : memref<32x4xf32, #tpu.memory_space<vmem>>, vector<32x4xf32>
    %c0_18 = arith.constant 0 : index
    %c0_19 = arith.constant 0 : index
    %32 = vector.load %arg7[%c0_18, %c0_19] : memref<4x32xf32, #tpu.memory_space<vmem>>, vector<4x32xf32>
    %c0_i32 = arith.constant 0 : i32
    %c3_i32 = arith.constant 3 : i32
    %33 = arith.addi %c0_i32, %c3_i32 : i32
    %c1_i32 = arith.constant 1 : i32
    %34 = scf.for %arg25 = %c0_i32 to %33 step %c1_i32 iter_args(%arg26 = %29) -> (vector<2x8x32xf32>)  : i32 {
      %36 = vector.shape_cast %arg26 : vector<2x8x32xf32> to vector<16x32xf32>
      %37 = vector.extract_strided_slice %arg26 {offsets = [0, 0, 0], sizes = [2, 1, 32], strides = [1, 1, 1]} : vector<2x8x32xf32> to vector<2x1x32xf32>
      %38 = vector.shape_cast %37 : vector<2x1x32xf32> to vector<2x32xf32>
      %39 = arith.index_cast %arg25 : i32 to index
      %c0_24 = arith.constant 0 : index
      %c0_25 = arith.constant 0 : index
      %40 = vector.load %arg8[%39, %c0_24, %c0_25] : memref<3x32x32xf32, #tpu.memory_space<vmem>>, vector<1x32x32xf32>
      %41 = vector.shape_cast %40 : vector<1x32x32xf32> to vector<32x32xf32>
      %cst_26 = arith.constant dense<0.000000e+00> : vector<2x32xf32>
      %42 = tpu.matmul %38, %41, %cst_26 {dimension_numbers = #tpu.dot_dimension_numbers<[1], [0], [0], [1], [0, 0, 1, 1], [], []>} : vector<2x32xf32>, vector<32x32xf32>, vector<2x32xf32> -> vector<2x32xf32>
      %43 = arith.index_cast %arg25 : i32 to index
      %c0_27 = arith.constant 0 : index
      %c0_28 = arith.constant 0 : index
      %44 = vector.load %arg9[%43, %c0_27, %c0_28] : memref<3x1x32xf32, #tpu.memory_space<vmem>>, vector<1x1x32xf32>
      %45 = vector.shape_cast %44 : vector<1x1x32xf32> to vector<1x32xf32>
      %46 = vector.broadcast %45 : vector<1x32xf32> to vector<2x32xf32>
      %47 = arith.addf %42, %46 : vector<2x32xf32>
      %48 = arith.index_cast %arg25 : i32 to index
      %c0_29 = arith.constant 0 : index
      %c0_30 = arith.constant 0 : index
      %49 = vector.load %arg10[%48, %c0_29, %c0_30] : memref<3x32x32xf32, #tpu.memory_space<vmem>>, vector<1x32x32xf32>
      %50 = vector.shape_cast %49 : vector<1x32x32xf32> to vector<32x32xf32>
      %cst_31 = arith.constant dense<0.000000e+00> : vector<16x32xf32>
      %51 = tpu.matmul %36, %50, %cst_31 {dimension_numbers = #tpu.dot_dimension_numbers<[1], [0], [0], [1], [0, 0, 1, 1], [], []>} : vector<16x32xf32>, vector<32x32xf32>, vector<16x32xf32> -> vector<16x32xf32>
      %52 = arith.index_cast %arg25 : i32 to index
      %c0_32 = arith.constant 0 : index
      %c0_33 = arith.constant 0 : index
      %53 = vector.load %arg11[%52, %c0_32, %c0_33] : memref<3x1x32xf32, #tpu.memory_space<vmem>>, vector<1x1x32xf32>
      %54 = vector.shape_cast %53 : vector<1x1x32xf32> to vector<1x32xf32>
      %55 = vector.broadcast %54 : vector<1x32xf32> to vector<16x32xf32>
      %56 = arith.addf %51, %55 : vector<16x32xf32>
      %57 = arith.index_cast %arg25 : i32 to index
      %c0_34 = arith.constant 0 : index
      %c0_35 = arith.constant 0 : index
      %58 = vector.load %arg12[%57, %c0_34, %c0_35] : memref<3x32x32xf32, #tpu.memory_space<vmem>>, vector<1x32x32xf32>
      %59 = vector.shape_cast %58 : vector<1x32x32xf32> to vector<32x32xf32>
      %cst_36 = arith.constant dense<0.000000e+00> : vector<16x32xf32>
      %60 = tpu.matmul %36, %59, %cst_36 {dimension_numbers = #tpu.dot_dimension_numbers<[1], [0], [0], [1], [0, 0, 1, 1], [], []>} : vector<16x32xf32>, vector<32x32xf32>, vector<16x32xf32> -> vector<16x32xf32>
      %61 = arith.index_cast %arg25 : i32 to index
      %c0_37 = arith.constant 0 : index
      %c0_38 = arith.constant 0 : index
      %62 = vector.load %arg13[%61, %c0_37, %c0_38] : memref<3x1x32xf32, #tpu.memory_space<vmem>>, vector<1x1x32xf32>
      %63 = vector.shape_cast %62 : vector<1x1x32xf32> to vector<1x32xf32>
      %64 = vector.broadcast %63 : vector<1x32xf32> to vector<16x32xf32>
      %65 = arith.addf %60, %64 : vector<16x32xf32>
      %66 = vector.shape_cast %56 : vector<16x32xf32> to vector<2x8x32xf32>
      %67 = vector.shape_cast %47 : vector<2x32xf32> to vector<2x1x32xf32>
      %68 = vector.broadcast %67 : vector<2x1x32xf32> to vector<2x8x32xf32>
      %69 = arith.mulf %66, %68 : vector<2x8x32xf32>
      %70 = vector.shape_cast %69 : vector<2x8x32xf32> to vector<16x32xf32>
      %cst_39 = arith.constant dense<0.000000e+00> : vector<16x4xf32>
      %71 = tpu.matmul %70, %31, %cst_39 {dimension_numbers = #tpu.dot_dimension_numbers<[1], [0], [0], [1], [0, 0, 1, 1], [], []>} : vector<16x32xf32>, vector<32x4xf32>, vector<16x4xf32> -> vector<16x4xf32>
      %72 = vector.shape_cast %71 : vector<16x4xf32> to vector<2x8x4xf32>
      %73 = vector.broadcast %30 : vector<1x8x1xf32> to vector<2x8x4xf32>
      %74 = arith.addf %72, %73 : vector<2x8x4xf32>
      %cst_40 = arith.constant dense<0xFF800000> : vector<2x4xf32>
      %75 = vector.multi_reduction <maximumf>, %74, %cst_40 [1] : vector<2x8x4xf32> to vector<2x4xf32>
      %76 = vector.shape_cast %75 : vector<2x4xf32> to vector<2x1x4xf32>
      %77 = vector.broadcast %76 : vector<2x1x4xf32> to vector<2x8x4xf32>
      %78 = arith.subf %74, %77 : vector<2x8x4xf32>
      %79 = math.exp %78 : vector<2x8x4xf32>
      %cst_41 = arith.constant dense<0.000000e+00> : vector<2x4xf32>
      %80 = vector.multi_reduction <add>, %79, %cst_41 [1] : vector<2x8x4xf32> to vector<2x4xf32>
      %81 = vector.shape_cast %79 : vector<2x8x4xf32> to vector<16x4xf32>
      %cst_42 = arith.constant dense<0.000000e+00> : vector<16x32xf32>
      %82 = tpu.matmul %81, %32, %cst_42 {dimension_numbers = #tpu.dot_dimension_numbers<[1], [0], [0], [1], [0, 0, 1, 1], [], []>} : vector<16x4xf32>, vector<4x32xf32>, vector<16x32xf32> -> vector<16x32xf32>
      %83 = vector.shape_cast %82 : vector<16x32xf32> to vector<2x8x32xf32>
      %84 = vector.shape_cast %65 : vector<16x32xf32> to vector<2x8x32xf32>
      %85 = arith.mulf %83, %84 : vector<2x8x32xf32>
      %cst_43 = arith.constant dense<0.000000e+00> : vector<2x32xf32>
      %86 = vector.multi_reduction <add>, %85, %cst_43 [1] : vector<2x8x32xf32> to vector<2x32xf32>
      %cst_44 = arith.constant dense<0.000000e+00> : vector<2x32xf32>
      %87 = tpu.matmul %80, %32, %cst_44 {dimension_numbers = #tpu.dot_dimension_numbers<[1], [0], [0], [1], [0, 0, 1, 1], [], []>} : vector<2x4xf32>, vector<4x32xf32>, vector<2x32xf32> -> vector<2x32xf32>
      %88 = tpu.reciprocal %87 : vector<2x32xf32> -> vector<2x32xf32>
      %89 = arith.mulf %86, %88 : vector<2x32xf32>
      %90 = arith.index_cast %arg25 : i32 to index
      %c0_45 = arith.constant 0 : index
      %c0_46 = arith.constant 0 : index
      %91 = vector.load %arg14[%90, %c0_45, %c0_46] : memref<3x32x32xf32, #tpu.memory_space<vmem>>, vector<1x32x32xf32>
      %92 = vector.shape_cast %91 : vector<1x32x32xf32> to vector<32x32xf32>
      %cst_47 = arith.constant dense<0.000000e+00> : vector<2x32xf32>
      %93 = tpu.matmul %89, %92, %cst_47 {dimension_numbers = #tpu.dot_dimension_numbers<[1], [0], [0], [1], [0, 0, 1, 1], [], []>} : vector<2x32xf32>, vector<32x32xf32>, vector<2x32xf32> -> vector<2x32xf32>
      %94 = arith.index_cast %arg25 : i32 to index
      %c0_48 = arith.constant 0 : index
      %c0_49 = arith.constant 0 : index
      %95 = vector.load %arg15[%94, %c0_48, %c0_49] : memref<3x1x32xf32, #tpu.memory_space<vmem>>, vector<1x1x32xf32>
      %96 = vector.shape_cast %95 : vector<1x1x32xf32> to vector<1x32xf32>
      %97 = vector.broadcast %96 : vector<1x32xf32> to vector<2x32xf32>
      %98 = arith.addf %93, %97 : vector<2x32xf32>
      %99 = vector.shape_cast %98 : vector<2x32xf32> to vector<2x1x32xf32>
      %100 = vector.broadcast %99 : vector<2x1x32xf32> to vector<2x8x32xf32>
      %101 = arith.addf %arg26, %100 : vector<2x8x32xf32>
      %102 = arith.index_cast %arg25 : i32 to index
      %c0_50 = arith.constant 0 : index
      %c0_51 = arith.constant 0 : index
      %103 = vector.load %arg16[%102, %c0_50, %c0_51] : memref<3x1x32xf32, #tpu.memory_space<vmem>>, vector<1x1x32xf32>
      %104 = vector.shape_cast %103 : vector<1x1x32xf32> to vector<1x32xf32>
      %105 = arith.index_cast %arg25 : i32 to index
      %c0_52 = arith.constant 0 : index
      %c0_53 = arith.constant 0 : index
      %106 = vector.load %arg17[%105, %c0_52, %c0_53] : memref<3x1x32xf32, #tpu.memory_space<vmem>>, vector<1x1x32xf32>
      %107 = vector.shape_cast %106 : vector<1x1x32xf32> to vector<1x32xf32>
      %cst_54 = arith.constant dense<0.000000e+00> : vector<2x8xf32>
      %108 = vector.multi_reduction <add>, %101, %cst_54 [2] : vector<2x8x32xf32> to vector<2x8xf32>
      %109 = vector.shape_cast %108 : vector<2x8xf32> to vector<2x8x1xf32>
      %cst_55 = arith.constant 3.200000e+01 : f32
      %110 = vector.broadcast %cst_55 : f32 to vector<2x8x1xf32>
      %111 = arith.divf %109, %110 : vector<2x8x1xf32>
      %112 = vector.broadcast %111 : vector<2x8x1xf32> to vector<2x8x32xf32>
      %113 = arith.subf %101, %112 : vector<2x8x32xf32>
      %114 = arith.mulf %113, %113 : vector<2x8x32xf32>
      %cst_56 = arith.constant dense<0.000000e+00> : vector<2x8xf32>
      %115 = vector.multi_reduction <add>, %114, %cst_56 [2] : vector<2x8x32xf32> to vector<2x8xf32>
      %116 = vector.shape_cast %115 : vector<2x8xf32> to vector<2x8x1xf32>
      %cst_57 = arith.constant 3.200000e+01 : f32
      %117 = vector.broadcast %cst_57 : f32 to vector<2x8x1xf32>
      %118 = arith.divf %116, %117 : vector<2x8x1xf32>
      %119 = vector.broadcast %111 : vector<2x8x1xf32> to vector<2x8x32xf32>
      %120 = arith.subf %101, %119 : vector<2x8x32xf32>
      %cst_58 = arith.constant 9.99999974E-6 : f32
      %121 = vector.broadcast %cst_58 : f32 to vector<2x8x1xf32>
      %122 = arith.addf %118, %121 : vector<2x8x1xf32>
      %123 = math.rsqrt %122 : vector<2x8x1xf32>
      %124 = vector.broadcast %123 : vector<2x8x1xf32> to vector<2x8x32xf32>
      %125 = arith.mulf %120, %124 : vector<2x8x32xf32>
      %126 = vector.shape_cast %104 : vector<1x32xf32> to vector<1x1x32xf32>
      %127 = vector.broadcast %126 : vector<1x1x32xf32> to vector<2x8x32xf32>
      %128 = arith.mulf %125, %127 : vector<2x8x32xf32>
      %129 = vector.shape_cast %107 : vector<1x32xf32> to vector<1x1x32xf32>
      %130 = vector.broadcast %129 : vector<1x1x32xf32> to vector<2x8x32xf32>
      %131 = arith.addf %128, %130 : vector<2x8x32xf32>
      %132 = vector.shape_cast %131 : vector<2x8x32xf32> to vector<16x32xf32>
      %133 = arith.index_cast %arg25 : i32 to index
      %c0_59 = arith.constant 0 : index
      %c0_60 = arith.constant 0 : index
      %134 = vector.load %arg18[%133, %c0_59, %c0_60] : memref<3x32x64xf32, #tpu.memory_space<vmem>>, vector<1x32x64xf32>
      %135 = vector.shape_cast %134 : vector<1x32x64xf32> to vector<32x64xf32>
      %cst_61 = arith.constant dense<0.000000e+00> : vector<16x64xf32>
      %136 = tpu.matmul %132, %135, %cst_61 {dimension_numbers = #tpu.dot_dimension_numbers<[1], [0], [0], [1], [0, 0, 1, 1], [], []>} : vector<16x32xf32>, vector<32x64xf32>, vector<16x64xf32> -> vector<16x64xf32>
      %137 = arith.index_cast %arg25 : i32 to index
      %c0_62 = arith.constant 0 : index
      %c0_63 = arith.constant 0 : index
      %138 = vector.load %arg19[%137, %c0_62, %c0_63] : memref<3x1x64xf32, #tpu.memory_space<vmem>>, vector<1x1x64xf32>
      %139 = vector.shape_cast %138 : vector<1x1x64xf32> to vector<1x64xf32>
      %140 = vector.broadcast %139 : vector<1x64xf32> to vector<16x64xf32>
      %141 = arith.addf %136, %140 : vector<16x64xf32>
      %cst_64 = arith.constant 0.000000e+00 : f32
      %142 = vector.broadcast %cst_64 : f32 to vector<16x64xf32>
      %143 = arith.maximumf %141, %142 : vector<16x64xf32>
      %144 = arith.index_cast %arg25 : i32 to index
      %c0_65 = arith.constant 0 : index
      %c0_66 = arith.constant 0 : index
      %145 = vector.load %arg20[%144, %c0_65, %c0_66] : memref<3x64x32xf32, #tpu.memory_space<vmem>>, vector<1x64x32xf32>
      %146 = vector.shape_cast %145 : vector<1x64x32xf32> to vector<64x32xf32>
      %cst_67 = arith.constant dense<0.000000e+00> : vector<16x32xf32>
      %147 = tpu.matmul %143, %146, %cst_67 {dimension_numbers = #tpu.dot_dimension_numbers<[1], [0], [0], [1], [0, 0, 1, 1], [], []>} : vector<16x64xf32>, vector<64x32xf32>, vector<16x32xf32> -> vector<16x32xf32>
      %148 = arith.index_cast %arg25 : i32 to index
      %c0_68 = arith.constant 0 : index
      %c0_69 = arith.constant 0 : index
      %149 = vector.load %arg21[%148, %c0_68, %c0_69] : memref<3x1x32xf32, #tpu.memory_space<vmem>>, vector<1x1x32xf32>
      %150 = vector.shape_cast %149 : vector<1x1x32xf32> to vector<1x32xf32>
      %151 = vector.broadcast %150 : vector<1x32xf32> to vector<16x32xf32>
      %152 = arith.addf %147, %151 : vector<16x32xf32>
      %153 = vector.shape_cast %152 : vector<16x32xf32> to vector<2x8x32xf32>
      %154 = arith.addf %131, %153 : vector<2x8x32xf32>
      %155 = arith.index_cast %arg25 : i32 to index
      %c0_70 = arith.constant 0 : index
      %c0_71 = arith.constant 0 : index
      %156 = vector.load %arg22[%155, %c0_70, %c0_71] : memref<3x1x32xf32, #tpu.memory_space<vmem>>, vector<1x1x32xf32>
      %157 = vector.shape_cast %156 : vector<1x1x32xf32> to vector<1x32xf32>
      %158 = arith.index_cast %arg25 : i32 to index
      %c0_72 = arith.constant 0 : index
      %c0_73 = arith.constant 0 : index
      %159 = vector.load %arg23[%158, %c0_72, %c0_73] : memref<3x1x32xf32, #tpu.memory_space<vmem>>, vector<1x1x32xf32>
      %160 = vector.shape_cast %159 : vector<1x1x32xf32> to vector<1x32xf32>
      %cst_74 = arith.constant dense<0.000000e+00> : vector<2x8xf32>
      %161 = vector.multi_reduction <add>, %154, %cst_74 [2] : vector<2x8x32xf32> to vector<2x8xf32>
      %162 = vector.shape_cast %161 : vector<2x8xf32> to vector<2x8x1xf32>
      %cst_75 = arith.constant 3.200000e+01 : f32
      %163 = vector.broadcast %cst_75 : f32 to vector<2x8x1xf32>
      %164 = arith.divf %162, %163 : vector<2x8x1xf32>
      %165 = vector.broadcast %164 : vector<2x8x1xf32> to vector<2x8x32xf32>
      %166 = arith.subf %154, %165 : vector<2x8x32xf32>
      %167 = arith.mulf %166, %166 : vector<2x8x32xf32>
      %cst_76 = arith.constant dense<0.000000e+00> : vector<2x8xf32>
      %168 = vector.multi_reduction <add>, %167, %cst_76 [2] : vector<2x8x32xf32> to vector<2x8xf32>
      %169 = vector.shape_cast %168 : vector<2x8xf32> to vector<2x8x1xf32>
      %cst_77 = arith.constant 3.200000e+01 : f32
      %170 = vector.broadcast %cst_77 : f32 to vector<2x8x1xf32>
      %171 = arith.divf %169, %170 : vector<2x8x1xf32>
      %172 = vector.broadcast %164 : vector<2x8x1xf32> to vector<2x8x32xf32>
      %173 = arith.subf %154, %172 : vector<2x8x32xf32>
      %cst_78 = arith.constant 9.99999974E-6 : f32
      %174 = vector.broadcast %cst_78 : f32 to vector<2x8x1xf32>
      %175 = arith.addf %171, %174 : vector<2x8x1xf32>
      %176 = math.rsqrt %175 : vector<2x8x1xf32>
      %177 = vector.broadcast %176 : vector<2x8x1xf32> to vector<2x8x32xf32>
      %178 = arith.mulf %173, %177 : vector<2x8x32xf32>
      %179 = vector.shape_cast %157 : vector<1x32xf32> to vector<1x1x32xf32>
      %180 = vector.broadcast %179 : vector<1x1x32xf32> to vector<2x8x32xf32>
      %181 = arith.mulf %178, %180 : vector<2x8x32xf32>
      %182 = vector.shape_cast %160 : vector<1x32xf32> to vector<1x1x32xf32>
      %183 = vector.broadcast %182 : vector<1x1x32xf32> to vector<2x8x32xf32>
      %184 = arith.addf %181, %183 : vector<2x8x32xf32>
      scf.yield %184 : vector<2x8x32xf32>
    }
    %c3_i32_20 = arith.constant 3 : i32
    %c0_21 = arith.constant 0 : index
    %c0_22 = arith.constant 0 : index
    %c0_23 = arith.constant 0 : index
    %35 = vector.load %arg24[%c0_21, %c0_22, %c0_23] : memref<2x8x32xf32, #tpu.memory_space<vmem>>, vector<2x8x32xf32>
    tpu.vector_store %arg24[%c0_21, %c0_22, %c0_23], %34 {strides = array<i32>} : memref<2x8x32xf32, #tpu.memory_space<vmem>>, vector<2x8x32xf32>,
    return
  }
  func.func @transform_0(%arg0: i32) -> (i32, i32, i32) {
    %c0_i32 = arith.constant 0 : i32
    %c0_i32_0 = arith.constant 0 : i32
    %c0_i32_1 = arith.constant 0 : i32
    return %arg0, %c0_i32, %c0_i32_0 : i32, i32, i32
  }
  func.func @transform_1(%arg0: i32) -> (i32, i32, i32) {
    %c0_i32 = arith.constant 0 : i32
    %c0_i32_0 = arith.constant 0 : i32
    %c0_i32_1 = arith.constant 0 : i32
    return %arg0, %c0_i32, %c0_i32_0 : i32, i32, i32
  }
  func.func @transform_2(%arg0: i32) -> (i32, i32) {
    %c0_i32 = arith.constant 0 : i32
    %c0_i32_0 = arith.constant 0 : i32
    %c0_i32_1 = arith.constant 0 : i32
    return %c0_i32, %c0_i32_0 : i32, i32
  }
  func.func @transform_3(%arg0: i32) -> (i32, i32) {
    %c0_i32 = arith.constant 0 : i32
    %c0_i32_0 = arith.constant 0 : i32
    %c0_i32_1 = arith.constant 0 : i32
    return %c0_i32, %c0_i32_0 : i32, i32
  }
  func.func @transform_4(%arg0: i32) -> (i32, i32, i32) {
    %c0_i32 = arith.constant 0 : i32
    %c0_i32_0 = arith.constant 0 : i32
    %c0_i32_1 = arith.constant 0 : i32
    %c0_i32_2 = arith.constant 0 : i32
    return %c0_i32, %c0_i32_0, %c0_i32_1 : i32, i32, i32
  }
  func.func @transform_5(%arg0: i32) -> (i32, i32) {
    %c0_i32 = arith.constant 0 : i32
    %c0_i32_0 = arith.constant 0 : i32
    %c0_i32_1 = arith.constant 0 : i32
    return %c0_i32, %c0_i32_0 : i32, i32
  }
  func.func @transform_6(%arg0: i32) -> (i32, i32) {
    %c0_i32 = arith.constant 0 : i32
    %c0_i32_0 = arith.constant 0 : i32
    %c0_i32_1 = arith.constant 0 : i32
    return %c0_i32, %c0_i32_0 : i32, i32
  }
  func.func @transform_7(%arg0: i32) -> (i32, i32, i32) {
    %c0_i32 = arith.constant 0 : i32
    %c0_i32_0 = arith.constant 0 : i32
    %c0_i32_1 = arith.constant 0 : i32
    %c0_i32_2 = arith.constant 0 : i32
    return %c0_i32, %c0_i32_0, %c0_i32_1 : i32, i32, i32
  }
  func.func @transform_8(%arg0: i32) -> (i32, i32, i32) {
    %c0_i32 = arith.constant 0 : i32
    %c0_i32_0 = arith.constant 0 : i32
    %c0_i32_1 = arith.constant 0 : i32
    %c0_i32_2 = arith.constant 0 : i32
    return %c0_i32, %c0_i32_0, %c0_i32_1 : i32, i32, i32
  }
  func.func @transform_9(%arg0: i32) -> (i32, i32, i32) {
    %c0_i32 = arith.constant 0 : i32
    %c0_i32_0 = arith.constant 0 : i32
    %c0_i32_1 = arith.constant 0 : i32
    %c0_i32_2 = arith.constant 0 : i32
    return %c0_i32, %c0_i32_0, %c0_i32_1 : i32, i32, i32
  }
  func.func @transform_10(%arg0: i32) -> (i32, i32, i32) {
    %c0_i32 = arith.constant 0 : i32
    %c0_i32_0 = arith.constant 0 : i32
    %c0_i32_1 = arith.constant 0 : i32
    %c0_i32_2 = arith.constant 0 : i32
    return %c0_i32, %c0_i32_0, %c0_i32_1 : i32, i32, i32
  }
  func.func @transform_11(%arg0: i32) -> (i32, i32, i32) {
    %c0_i32 = arith.constant 0 : i32
    %c0_i32_0 = arith.constant 0 : i32
    %c0_i32_1 = arith.constant 0 : i32
    %c0_i32_2 = arith.constant 0 : i32
    return %c0_i32, %c0_i32_0, %c0_i32_1 : i32, i32, i32
  }
  func.func @transform_12(%arg0: i32) -> (i32, i32, i32) {
    %c0_i32 = arith.constant 0 : i32
    %c0_i32_0 = arith.constant 0 : i32
    %c0_i32_1 = arith.constant 0 : i32
    %c0_i32_2 = arith.constant 0 : i32
    return %c0_i32, %c0_i32_0, %c0_i32_1 : i32, i32, i32
  }
  func.func @transform_13(%arg0: i32) -> (i32, i32, i32) {
    %c0_i32 = arith.constant 0 : i32
    %c0_i32_0 = arith.constant 0 : i32
    %c0_i32_1 = arith.constant 0 : i32
    %c0_i32_2 = arith.constant 0 : i32
    return %c0_i32, %c0_i32_0, %c0_i32_1 : i32, i32, i32
  }
  func.func @transform_14(%arg0: i32) -> (i32, i32, i32) {
    %c0_i32 = arith.constant 0 : i32
    %c0_i32_0 = arith.constant 0 : i32
    %c0_i32_1 = arith.constant 0 : i32
    %c0_i32_2 = arith.constant 0 : i32
    return %c0_i32, %c0_i32_0, %c0_i32_1 : i32, i32, i32
  }
  func.func @transform_15(%arg0: i32) -> (i32, i32, i32) {
    %c0_i32 = arith.constant 0 : i32
    %c0_i32_0 = arith.constant 0 : i32
    %c0_i32_1 = arith.constant 0 : i32
    %c0_i32_2 = arith.constant 0 : i32
    return %c0_i32, %c0_i32_0, %c0_i32_1 : i32, i32, i32
  }
  func.func @transform_16(%arg0: i32) -> (i32, i32, i32) {
    %c0_i32 = arith.constant 0 : i32
    %c0_i32_0 = arith.constant 0 : i32
    %c0_i32_1 = arith.constant 0 : i32
    %c0_i32_2 = arith.constant 0 : i32
    return %c0_i32, %c0_i32_0, %c0_i32_1 : i32, i32, i32
  }
  func.func @transform_17(%arg0: i32) -> (i32, i32, i32) {
    %c0_i32 = arith.constant 0 : i32
    %c0_i32_0 = arith.constant 0 : i32
    %c0_i32_1 = arith.constant 0 : i32
    %c0_i32_2 = arith.constant 0 : i32
    return %c0_i32, %c0_i32_0, %c0_i32_1 : i32, i32, i32
  }
  func.func @transform_18(%arg0: i32) -> (i32, i32, i32) {
    %c0_i32 = arith.constant 0 : i32
    %c0_i32_0 = arith.constant 0 : i32
    %c0_i32_1 = arith.constant 0 : i32
    %c0_i32_2 = arith.constant 0 : i32
    return %c0_i32, %c0_i32_0, %c0_i32_1 : i32, i32, i32
  }
  func.func @transform_19(%arg0: i32) -> (i32, i32, i32) {
    %c0_i32 = arith.constant 0 : i32
    %c0_i32_0 = arith.constant 0 : i32
    %c0_i32_1 = arith.constant 0 : i32
    %c0_i32_2 = arith.constant 0 : i32
    return %c0_i32, %c0_i32_0, %c0_i32_1 : i32, i32, i32
  }
  func.func @transform_20(%arg0: i32) -> (i32, i32, i32) {
    %c0_i32 = arith.constant 0 : i32
    %c0_i32_0 = arith.constant 0 : i32
    %c0_i32_1 = arith.constant 0 : i32
    %c0_i32_2 = arith.constant 0 : i32
    return %c0_i32, %c0_i32_0, %c0_i32_1 : i32, i32, i32
  }
  func.func @transform_21(%arg0: i32) -> (i32, i32, i32) {
    %c0_i32 = arith.constant 0 : i32
    %c0_i32_0 = arith.constant 0 : i32
    %c0_i32_1 = arith.constant 0 : i32
    %c0_i32_2 = arith.constant 0 : i32
    return %c0_i32, %c0_i32_0, %c0_i32_1 : i32, i32, i32
  }
  func.func @transform_22(%arg0: i32) -> (i32, i32, i32) {
    %c0_i32 = arith.constant 0 : i32
    %c0_i32_0 = arith.constant 0 : i32
    %c0_i32_1 = arith.constant 0 : i32
    %c0_i32_2 = arith.constant 0 : i32
    return %c0_i32, %c0_i32_0, %c0_i32_1 : i32, i32, i32
  }
  func.func @transform_23(%arg0: i32) -> (i32, i32, i32) {
    %c0_i32 = arith.constant 0 : i32
    %c0_i32_0 = arith.constant 0 : i32
    %c0_i32_1 = arith.constant 0 : i32
    return %arg0, %c0_i32, %c0_i32_0 : i32, i32, i32
  }
}

</mosaic_0001>

<bundles_post_ra>
// kernel: custom_transformer_encoder.1
= control target key start
LH: loop header
LB: loop body
LE: loop exit
PB: predicated region body
PF: predicated region fallthrough
CT: control target
= control target key end

     0   :  { %vm78_vm0 = vcmask 261120   ;;  %v836_v4 = vmov 32.0   ;;  %s1231_s0 = inlined_call_operand.vmem [shape: f32[2,8,32], index: 0, kind: input, shape index: {}]   ;;  %s1232_s1 = inlined_call_operand.vmem [shape: f32[2,1,32], index: 1, kind: input, shape index: {}]   ;;  %s1233_s2 = inlined_call_operand.vmem [shape: f32[1,32], index: 2, kind: input, shape index: {}]   ;;  %s1234_s3 = inlined_call_operand.vmem [shape: f32[1,32], index: 3, kind: input, shape index: {}]   ;;  %s1235_s7 = inlined_call_operand.vmem [shape: f32[3,32,32], index: 7, kind: input, shape index: {}]   ;;  %s1236_s8 = inlined_call_operand.vmem [shape: f32[3,1,32], index: 8, kind: input, shape index: {}]   ;;  %s1237_s9 = inlined_call_operand.vmem [shape: f32[3,32,32], index: 9, kind: input, shape index: {}]   ;;  %s1238_s10 = inlined_call_operand.vmem [shape: f32[3,1,32], index: 10, kind: input, shape index: {}]   ;;  %s1239_s11 = inlined_call_operand.vmem [shape: f32[3,32,32], index: 11, kind: input, shape index: {}]   ;;  %s1240_s12 = inlined_call_operand.vmem [shape: f32[3,1,32], index: 12, kind: input, shape index: {}]   ;;  %s1241_s13 = inlined_call_operand.vmem [shape: f32[3,32,32], index: 13, kind: input, shape index: {}]   ;;  %s1242_s14 = inlined_call_operand.vmem [shape: f32[3,1,32], index: 14, kind: input, shape index: {}]   ;;  %s1243_s15 = inlined_call_operand.vmem [shape: f32[3,1,32], index: 15, kind: input, shape index: {}]   ;;  %s1244_s16 = inlined_call_operand.vmem [shape: f32[3,1,32], index: 16, kind: input, shape index: {}]   ;;  %s1245_s17 = inlined_call_operand.vmem [shape: f32[3,32,64], index: 17, kind: input, shape index: {}]   ;;  %s1246_s18 = inlined_call_operand.vmem [shape: f32[3,1,64], index: 18, kind: input, shape index: {}]   ;;  %s1247_s19 = inlined_call_operand.vmem [shape: f32[3,64,32], index: 19, kind: input, shape index: {}]   ;;  %s1248_s20 = inlined_call_operand.vmem [shape: f32[3,1,32], index: 20, kind: input, shape index: {}]   ;;  %s1249_s21 = inlined_call_operand.vmem [shape: f32[3,1,32], index: 21, kind: input, shape index: {}]   ;;  %s1250_s22 = inlined_call_operand.vmem [shape: f32[3,1,32], index: 22, kind: input, shape index: {}]   ;;  %s1251_s23 = inlined_call_operand.vmem [shape: f32[2,8,32], index: 23, kind: output, shape index: {}]   ;;  %s1252_s4 = inlined_call_operand.vmem [shape: f32[1,8,1], index: 4, kind: input, shape index: {}]   ;;  %s1253_s5 = inlined_call_operand.vmem [shape: f32[32,4], index: 5, kind: input, shape index: {}]   ;;  %s1254_s6 = inlined_call_operand.vmem [shape: f32[4,32], index: 6, kind: input, shape index: {}]  }
   0x1   :  { %1258 = sst [smem:[#allocation2_spill]] %s1231_s0  ;;  %781 = vrcp.f32 %v836_v4  ;;  %v980_v24 = vld [vmem:[%s1252_s4] sm:$0xff]  ;;  %v990_v26 = vld [vmem:[%s1253_s5 + $0x8] sm:$0xff]  ;;  %v995_v27 = vld [vmem:[%s1253_s5 + $0x10] sm:$0xff] }
   0x2   :  { %1259 = sst [smem:[#allocation3_spill]] %s1232_s1  ;;  %v985_v25 = vld [vmem:[%s1253_s5] sm:$0xff]  ;;  %v1000_v28 = vld [vmem:[%s1253_s5 + $0x18] sm:$0xff] }
   0x3   :  { %1260 = sst [smem:[#allocation4_spill]] %s1233_s2  ;;  %v1005_v29 = vld [vmem:[%s1254_s6] sm:$0xf] }
   0x4   :  { %1261 = sst [smem:[#allocation5_spill]] %s1234_s3 }
   0x5   :  { %1262 = sst [smem:[#allocation6_spill]] %s1235_s7 }
   0x6   :  { %1263 = sst [smem:[#allocation7_spill]] %s1236_s8 }
   0x7   :  { %1264 = sst [smem:[#allocation8_spill]] %s1237_s9  ;;  %v782_v5 = vpop.eup %781 }
   0x8   :  { %1265 = sst [smem:[#allocation9_spill]] %s1238_s10  ;;  %v86_v6 = vmul.f32 32.0, %v782_v5  ;;  %vm90_vm1 = vweird.f32 %v782_v5  ;;  %s1025_s10 = smov 0  }
   0x9   :  { %s1266_s24 = sld [smem:[#allocation2_spill]] }
   0xa   :  { %v87_v7 = vsub.f32 1.0, %v86_v6  ;;  %s1268_s8 = sld [smem:[#allocation5_spill]] }
   0xb   :  { %s1269_s2 = sld [smem:[#allocation3_spill]] }
   0xc   :  { %v88_v8 = vmul.f32 %v782_v5, %v87_v7 }
   0xe   :  { %v89_v9 = vadd.f32 %v782_v5, %v88_v8 }
   0xf   :  { %v74_v0 = vld [vmem:[%s1266_s24] sm:$0xff]  ;;  %v75_v2 = vld [vmem:[%s1266_s24 + $0x8] sm:$0xff]  ;;  %s1267_s24 = sld [smem:[#allocation4_spill]] }
  0x10   :  { %v79_v1 = vsel %vm78_vm0, %v74_v0, 0.0  ;;  %v82_v3 = vsel %vm78_vm0, %v75_v2, 0.0  ;;  %v966_v10 = vsel %vm90_vm1, %v782_v5, %v89_v9  ;;  %v778_v44 = vld [vmem:[%s1268_s8] ss:$0 sm:$0xff] }
  0x11   :  { %80 = vadd.xlane.f32.xlu0 %v79_v1  ;;  %v779_v47 = vld [vmem:[%s1269_s2] ss:$0 sm:$0xff]  ;;  %v780_v55 = vld [vmem:[%s1269_s2 + $0x1] ss:$0 sm:$0xff] }
  0x15   :  { %v777_v41 = vld [vmem:[%s1267_s24] ss:$0 sm:$0xff] }
  0x19   :  { %83 = vadd.xlane.f32.xlu0 %v82_v3 }
  0x84   :  { %v81_v11 = vpop.xlane.xlu0 %80 }
  0x85   :  { %v92_v12 = vmul.f32 %v966_v10, %v81_v11 }
  0x87   :  { %v94_v13 = vsub.f32 %v74_v0, %v92_v12 }
  0x89   :  { %v96_v14 = vmul.f32 %v94_v13, %v94_v13 }
  0x8b   :  { %v98_v15 = vsel %vm78_vm0, %v96_v14, 0.0 }
  0x8c   :  { %99 = vadd.xlane.f32.xlu1 %v98_v15  ;;  %v84_v16 = vpop.xlane.xlu0 %83 }
  0x8d   :  { %v93_v17 = vmul.f32 %v966_v10, %v84_v16 }
  0x8f   :  { %v971_v18 = vsub.f32 %v75_v2, %v93_v17 }
  0x91   :  { %v97_v19 = vmul.f32 %v971_v18, %v971_v18 }
  0x93   :  { %v101_v20 = vsel %vm78_vm0, %v97_v19, 0.0 }
  0x94   :  { %102 = vadd.xlane.f32.xlu1 %v101_v20 }
  0xff   :  { %v100_v21 = vpop.xlane.xlu1 %99 }
 0x100   :  { %v104_v22 = vmul.f32 %v100_v21, %v966_v10 }
 0x102   :  { %v106_v23 = vadd.f32 1e-05, %v104_v22 }
 0x104   :  { %783 = vrsqrt.f32 %v106_v23  ;;  %vm114_vm3 = vweird.f32 %v106_v23 }
 0x107   :  { %v103_v30 = vpop.xlane.xlu1 %102 }
 0x108   :  { %v105_v31 = vmul.f32 %v103_v30, %v966_v10 }
 0x10a   :  { %v784_v32 = vpop.eup %783  ;;  %v107_v33 = vadd.f32 1e-05, %v105_v31 }
 0x10b   :  { %v109_v34 = vmul.f32 %v784_v32, %v106_v23  ;;  %vm115_vm2 = vweird.f32 %v784_v32 }
 0x10c   :  { %785 = vrsqrt.f32 %v107_v33  ;;  %vm116_vm4 = vmor %vm114_vm3, %vm115_vm2  ;;  %vm124_vm6 = vweird.f32 %v107_v33 }
 0x10d   :  { %v110_v35 = vmul.f32 %v784_v32, %v109_v34 }
 0x10f   :  { %v111_v36 = vmul.f32 0.5, %v110_v35 }
 0x111   :  { %v112_v37 = vsub.f32 1.5, %v111_v36 }
 0x112   :  { %v786_v38 = vpop.eup %785 }
 0x113   :  { %v113_v39 = vmul.f32 %v784_v32, %v112_v37  ;;  %v119_v40 = vmul.f32 %v786_v38, %v107_v33  ;;  %vm125_vm5 = vweird.f32 %v786_v38 }
 0x114   :  { %vm126_vm7 = vmor %vm124_vm6, %vm125_vm5 }
 0x115   :  { %v117_v42 = vsel %vm116_vm4, %v784_v32, %v113_v39  ;;  %v120_v43 = vmul.f32 %v786_v38, %v119_v40 }
 0x116   :  { %v128_v45 = vmul.f32 %v117_v42, %v94_v13 }
 0x117   :  { %v121_v46 = vmul.f32 0.5, %v120_v43 }
 0x118   :  { %v133_v48 = vmul.f32 %v777_v41, %v128_v45 }
 0x119   :  { %v122_v49 = vsub.f32 1.5, %v121_v46 }
 0x11a   :  { %v138_v50 = vadd.f32 %v778_v44, %v133_v48 }
 0x11b   :  { %v123_v51 = vmul.f32 %v786_v38, %v122_v49 }
 0x11c   :  { %v148_v52 = vadd.f32 %v779_v47, %v138_v50  }
 0x11d   :  { %v127_v53 = vsel %vm126_vm7, %v786_v38, %v123_v51 }
 0x11e   :  { %v129_v54 = vmul.f32 %v127_v53, %v971_v18 }
 0x120   :  { %v134_v56 = vmul.f32 %v777_v41, %v129_v54 }
 0x122   :  { %v139_v57 = vadd.f32 %v778_v44, %v134_v56 }
 0x124   :  { %v149_v58 = vadd.f32 %v780_v55, %v139_v57  }
 0x125 LB: > { %298 = vmatpush.msra.mxu3 %v1000_v28  ;;  %s1038_s28 = sshll.u32 %s834_s10, 5  ;;  %s1270_s0 = sld [smem:[#allocation7_spill]]  ;;  %v177_v61 = vrot.slane %v826_v58, 7  ;;  %vm178_vm8 = vcmask 1041409   ;;  %v837_v5 = vmov 0   ;;  %vm357_vm9 = vcmask 1043456   ;;  %s834_s10 = sphi %s1025_s10, %s161_s10   ;;  %v830_v52 = vphi %v148_v52, %v1275_v52   ;;  %v826_v58 = vphi %v149_v58, %v1274_v58  }
 0x126   : > { %s1271_s30 = sld [smem:[#allocation6_spill]]  ;;  %787 = vset.pattern.permute.xlu0 %v837_v5  ;;  %s239_s6 = scalar_lea.vmem %s1239_s11, %s1038_s28  ;;  %740 = vmatpush.msk.msra.mxu0 %vm357_vm9, %v1005_v29  ;;  %vm316_vm10 = vcmask 31744   ;;  %vm603_vm6 = vcmask 523264  }
 0x127   : > { %299 = vmatpush.msra.mxu3 %v995_v27  ;;  %s1272_s8 = sld [smem:[#allocation8_spill]]  ;;  %v179_v0 = vsel %vm178_vm8, %v177_v61, %v830_v52  ;;  %311 = vperm.xlu0 %787, %v980_v24   ;;  %v243_v20 = vld [vmem:[%s239_s6 + $0x18] sm:$0xff]  ;;  %v242_v21 = vld [vmem:[%s239_s6 + $0x10] sm:$0xff]  ;;  %v241_v22 = vld [vmem:[%s239_s6 + $0x8] sm:$0xff]  ;;  %s491_s25 = scalar_lea.vmem %s1244_s16, %s834_s10 }
 0x128   : > { %s1273_s9 = sld [smem:[#allocation9_spill]]  ;;  %261 = vmatpush.msra.mxu2 %v243_v20  ;;  %v240_v23 = vld [vmem:[%s239_s6] sm:$0xff]  ;;  %s552_s26 = scalar_lea.vmem %s1246_s18, %s834_s10 }
 0x129   : > { %300 = vmatpush.msra.mxu3 %v990_v26  ;;  %s748_s29 = sshll.u32 %s834_s10, 6  ;;  %s637_s7 = scalar_lea.vmem %s1250_s22, %s834_s10 }
 0x12a   : > { %262 = vmatpush.msra.mxu2 %v242_v21  ;;  %s1156_s5 = scalar_lea.vmem %s1247_s19, %s748_s29 }
 0x12b   : > { %s170_s4 = scalar_lea.vmem %s1270_s0, %s834_s10  ;;  %301 = vmatpush.msra.mxu3 %v985_v25 }
 0x12c   : > { %s165_s24 = scalar_lea.vmem %s1271_s30, %s1038_s28  ;;  %v788_v7 = vld [vmem:[%s170_s4] ss:$0 sm:$0xff]  ;;  %s244_s30 = scalar_lea.vmem %s1240_s12, %s834_s10  ;;  %263 = vmatpush.msra.mxu2 %v241_v22 }
 0x12d   : > { %v169_v59 = vld [vmem:[%s165_s24 + $0x18] sm:$0xff]  ;;  %v168_v60 = vld [vmem:[%s165_s24 + $0x10] sm:$0xff]  ;;  %v167_v62 = vld [vmem:[%s165_s24 + $0x8] sm:$0xff]  ;;  %s202_s1 = scalar_lea.vmem %s1272_s8, %s1038_s28  ;;  %s489_s4 = scalar_lea.vmem %s1243_s15, %s834_s10 }
 0x12e   : > { %194 = vmatpush.msra.mxu1 %v169_v59  ;;  %v166_v63 = vld [vmem:[%s165_s24] sm:$0xff]  ;;  %v206_v1 = vld [vmem:[%s202_s1 + $0x18] sm:$0xff]  ;;  %v205_v2 = vld [vmem:[%s202_s1 + $0x10] sm:$0xff]  ;;  %s207_s27 = scalar_lea.vmem %s1273_s9, %s834_s10  ;;  %264 = vmatpush.msra.mxu2 %v240_v23  ;;  %s445_s9 = scalar_lea.vmem %s1241_s13, %s1038_s28 }
 0x12f   : > { %v204_v3 = vld [vmem:[%s202_s1 + $0x8] sm:$0xff]  ;;  %v203_v4 = vld [vmem:[%s202_s1] sm:$0xff]  ;;  %736 = vmatmul.msk.f32.vlgmr.msra.gmra.mxu2 %vm78_vm0, %v830_v52  ;;  %s450_s1 = scalar_lea.vmem %s1242_s14, %s834_s10 }
 0x130   : > { %195 = vmatpush.msra.mxu1 %v168_v60  ;;  %v789_v9 = vld [vmem:[%s207_s27] ss:$0 sm:$0xff]  ;;  %s547_s27 = scalar_lea.vmem %s1245_s17, %s1038_s28 }
 0x132   : > { %196 = vmatpush.msra.mxu1 %v167_v62 }
 0x134   : > { %197 = vmatpush.msra.mxu1 %v166_v63 }
 0x135   : > { %733 = vmatmul.msk.f32.vlgmr.msra.gmra.mxu1 %vm78_vm0, %v179_v0 }
 0x136   : > { %228 = vmatpush.msrb.mxu1 %v206_v1 }
 0x137   : > { %737 = vmatmul.msk.f32.gmra.mxu2 %vm78_vm0, %v826_v58 }
 0x138   : > { %229 = vmatpush.msrb.mxu1 %v205_v2 }
 0x13a   : > { %230 = vmatpush.msrb.mxu1 %v204_v3 }
 0x13c   : > { %231 = vmatpush.msrb.mxu1 %v203_v4 }
 0x13d   : > { %734 = vmatmul.msk.f32.vlgmr.msrb.gmra.mxu1 %vm78_vm0, %v830_v52 }
 0x13e   : > { %743 = vmatpush.msk.msra.mxu1 %vm357_vm9, %v1005_v29 }
 0x145   : > { %735 = vmatmul.msk.f32.gmra.mxu1 %vm78_vm0, %v826_v58 }
 0x199   : > { %v312_v30 = vpop.permute.xlu0 %311 }
 0x1b2   : > { %v199_v6 = vpop.f32.mrf.mxu1 }
 0x1b3   : > { %v200_v8 = vadd.f32 %v788_v7, %v199_v6 }
 0x1b5   : > { %v274_v12 = vperm.slane %v200_v8, 0  ;;  %v273_v15 = vrot.slane %v200_v8, 1  ;;  %v266_v8 = vpop.f32.mrf.mxu2 }
 0x1b7   : > { %v275_v17 = vperm.slane %v273_v15, 0  ;;  %v447_v15 = vld [vmem:[%s445_s9 + $0x8] sm:$0xff] }
 0x1ba   : > { %v233_v11 = vpop.f32.mrf.mxu1 }
 0x1bb   : > { %v234_v13 = vadd.f32 %v789_v9, %v233_v11 }
 0x1bd   : > { %v278_v14 = vmul.f32 %v274_v12, %v234_v13  ;;  %v269_v11 = vpop.f32.mrf.mxu2  ;;  %v449_v12 = vld [vmem:[%s445_s9 + $0x18] sm:$0xff]  ;;  %v448_v13 = vld [vmem:[%s445_s9 + $0x10] sm:$0xff] }
 0x1be   : > { %473 = vmatpush.msrb.mxu2 %v449_v12 }
 0x1bf   : > { %738 = vmatmul.msk.f32.vlgmr.msra.gmra.mxu3 %vm78_vm0, %v278_v14  ;;  %v790_v14 = vld [vmem:[%s244_s30] ss:$0 sm:$0xff] }
 0x1c0   : > { %474 = vmatpush.msrb.mxu2 %v448_v13 }
 0x1c2   : > { %v236_v16 = vpop.f32.mrf.mxu1  ;;  %475 = vmatpush.msrb.mxu2 %v447_v15  ;;  %v551_v15 = vld [vmem:[%s547_s27 + $0x18] sm:$0xff] }
 0x1c3   : > { %v237_v18 = vadd.f32 %v789_v9, %v236_v16  ;;  %v270_v16 = vadd.f32 %v790_v14, %v269_v11  ;;  %575 = vmatpush.msrb.mxu3 %v551_v15 }
 0x1c5   : > { %v279_v19 = vmul.f32 %v275_v17, %v237_v18  ;;  %v446_v18 = vld [vmem:[%s445_s9] sm:$0xff] }
 0x1c6   : > { %476 = vmatpush.msrb.mxu2 %v446_v18  ;;  %v548_v18 = vld [vmem:[%s547_s27] sm:$0xff] }
 0x1c7   : > { %739 = vmatmul.msk.f32.gmra.mxu3 %vm78_vm0, %v279_v19  ;;  %v267_v19 = vadd.f32 %v790_v14, %v266_v8 }
 0x242   : > { %v303_v31 = vpop.f32.mrf.mxu3 }
 0x243   : > { %v314_v32 = vadd.f32 %v312_v30, %v303_v31 }
 0x245   : > { %v317_v33 = vsel %vm316_vm10, %v314_v32, -inf }
 0x246   : > { %v318_v34 = vrot.slane %v317_v33, 4 }
 0x248   : > { %v319_v35 = vmax.f32 %v317_v33, %v318_v34 }
 0x24a   : > { %v320_v36 = vrot.slane %v319_v35, 2  ;;  %v306_v37 = vpop.f32.mrf.mxu3 }
 0x24b   : > { %v315_v38 = vadd.f32 %v312_v30, %v306_v37 }
 0x24c   : > { %v321_v39 = vmax.f32 %v319_v35, %v320_v36 }
 0x24d   : > { %v324_v40 = vsel %vm316_vm10, %v315_v38, -inf }
 0x24e   : > { %v322_v41 = vrot.slane %v321_v39, 1  ;;  %v325_v42 = vrot.slane %v324_v40, 4 }
 0x250   : > { %v323_v43 = vmax.f32 %v321_v39, %v322_v41  ;;  %v326_v44 = vmax.f32 %v324_v40, %v325_v42 }
 0x252   : > { %v331_v45 = vsub.f32 %v314_v32, %v323_v43  ;;  %v327_v46 = vrot.slane %v326_v44, 2 }
 0x254   : > { %v333_v47 = vmul.f32 1.442695, %v331_v45  ;;  %v328_v48 = vmax.f32 %v326_v44, %v327_v46 }
 0x256   : > { %798 = vpow2.f32 %v333_v47  ;;  %v329_v49 = vrot.slane %v328_v48, 1 }
 0x258   : > { %v330_v50 = vmax.f32 %v328_v48, %v329_v49 }
 0x25a   : > { %v332_v51 = vsub.f32 %v315_v38, %v330_v50 }
 0x25c   : > { %v799_v53 = vpop.eup %798  ;;  %v335_v54 = vmul.f32 1.442695, %v332_v51 }
 0x25d   : > { %v337_v55 = vsel %vm316_vm10, %v799_v53, 0.0  ;;  %741 = vmatmul.msk.f32.vlgmr.msra.gmra.mxu0 %vm316_vm10, %v799_v53 }
 0x25e   : > { %v338_v56 = vrot.slane %v337_v55, 4  ;;  %800 = vpow2.f32 %v335_v54 }
 0x260   : > { %v339_v57 = vadd.f32 %v338_v56, %v337_v55 }
 0x262   : > { %v340_v60 = vrot.slane %v339_v57, 2 }
 0x264   : > { %v801_v59 = vpop.eup %800  ;;  %v341_v0 = vadd.f32 %v340_v60, %v339_v57  ;;  %v791_v60 = vld [vmem:[%s450_s1] ss:$0 sm:$0xff]  ;;  %s598_s1 = scalar_lea.vmem %s1248_s20, %s834_s10 }
 0x265   : > { %v344_v61 = vsel %vm316_vm10, %v801_v59, 0.0  ;;  %742 = vmatmul.msk.f32.gmra.mxu0 %vm316_vm10, %v801_v59 }
 0x266   : > { %v345_v62 = vrot.slane %v344_v61, 4  ;;  %v342_v2 = vrot.slane %v341_v0, 1 }
 0x268   : > { %v346_v63 = vadd.f32 %v345_v62, %v344_v61  ;;  %v343_v5 = vadd.f32 %v342_v2, %v341_v0 }
 0x26a   : > { %v347_v1 = vrot.slane %v346_v63, 2 }
 0x26c   : > { %v348_v3 = vadd.f32 %v347_v1, %v346_v63 }
 0x26e   : > { %v349_v4 = vrot.slane %v348_v3, 1 }
 0x270   : > { %v350_v6 = vadd.f32 %v349_v4, %v348_v3 }
 0x272   : > { %v402_v7 = vsel %vm178_vm8, %v350_v6, %v343_v5 }
 0x273   : > { %744 = vmatmul.msk.f32.vlgmr.msra.gmra.mxu1 %vm316_vm10, %v402_v7 }
 0x2da   : > { %v378_v9 = vpop.f32.mrf.mxu0 }
 0x2db   : > { %v384_v21 = vmul.f32 %v378_v9, %v267_v19 }
 0x2dd   : > { %v386_v23 = vsel %vm78_vm0, %v384_v21, 0.0 }
 0x2de   : > { %v387_v31 = vrot.slane %v386_v23, 4 }
 0x2e0   : > { %v388_v34 = vadd.f32 %v387_v31, %v386_v23  ;;  %v597_v31 = vld [vmem:[%s1156_s5 + $0x38] sm:$0xff] }
 0x2e1   : > { %618 = vmatpush.msrb.mxu0 %v597_v31 }
 0x2e2   : > { %v381_v17 = vpop.f32.mrf.mxu0  ;;  %v389_v37 = vrot.slane %v388_v34, 2 }
 0x2e3   : > { %v385_v20 = vmul.f32 %v381_v17, %v270_v16  ;;  %v550_v16 = vld [vmem:[%s547_s27 + $0x10] sm:$0xff]  ;;  %v549_v17 = vld [vmem:[%s547_s27 + $0x8] sm:$0xff]  ;;  %s635_s27 = scalar_lea.vmem %s1249_s21, %s834_s10  ;;  %s161_s10 = sadd.s32 1, %s834_s10  }
 0x2e4   : > { %v390_v42 = vadd.f32 %v389_v37, %v388_v34  ;;  %576 = vmatpush.msrb.mxu3 %v550_v16  ;;  %v594_v34 = vld [vmem:[%s1156_s5 + $0x20] sm:$0xff]  ;;  %p158_p0 = scmp.ge.s32.totalorder %s161_s10, 3  }
 0x2e5   : > { %v393_v22 = vsel %vm78_vm0, %v385_v20, 0.0 }
 0x2e6   : > { %v394_v30 = vrot.slane %v393_v22, 4  ;;  %v391_v48 = vrot.slane %v390_v42, 1  ;;  %577 = vmatpush.msrb.mxu3 %v549_v17 }
 0x2e8   : > { %v395_v33 = vadd.f32 %v394_v30, %v393_v22  ;;  %v392_v54 = vadd.f32 %v391_v48, %v390_v42  ;;  %578 = vmatpush.msrb.mxu3 %v548_v18  ;;  %v792_v48 = vld [vmem:[%s489_s4] ss:$0 sm:$0xff] }
 0x2ea   : > { %v396_v35 = vrot.slane %v395_v33, 2 }
 0x2ec   : > { %v397_v39 = vadd.f32 %v396_v35, %v395_v33  ;;  %v595_v33 = vld [vmem:[%s1156_s5 + $0x28] sm:$0xff] }
 0x2ee   : > { %v398_v45 = vrot.slane %v397_v39, 1 }
 0x2f0   : > { %v422_v32 = vpop.f32.mrf.mxu1  ;;  %v399_v51 = vadd.f32 %v398_v45, %v397_v39  ;;  %v592_v39 = vld [vmem:[%s1156_s5 + $0x10] sm:$0xff] }
 0x2f1   : > { %802 = vrcp.f32 %v422_v32  ;;  %v436_v41 = vand.u32 2147483648, %v422_v32  ;;  %v434_v44 = vand.u32 2147483647, %v422_v32  ;;  %vm430_vm12 = vweird.f32 %v422_v32 }
 0x2f3   : > { %v437_v47 = vor.u32 1.1754944e-38, %v436_v41  ;;  %vm435_vm14 = vcmp.eq.f32.partialorder %v434_v44, 8.507059e+37 }
 0x2f7   : > { %v803_v36 = vpop.eup %802 }
 0x2f8   : > { %v426_v38 = vmul.f32 %v803_v36, %v422_v32  ;;  %vm431_vm11 = vweird.f32 %v803_v36  ;;  %v596_v32 = vld [vmem:[%s1156_s5 + $0x30] sm:$0xff] }
 0x2f9   : > { %vm432_vm13 = vmor %vm430_vm12, %vm431_vm11  ;;  %619 = vmatpush.msrb.mxu0 %v596_v32 }
 0x2fa   : > { %v427_v40 = vsub.f32 1.0, %v426_v38 }
 0x2fb   : > { %620 = vmatpush.msrb.mxu0 %v595_v33 }
 0x2fc   : > { %v428_v43 = vmul.f32 %v803_v36, %v427_v40 }
 0x2fd   : > { %621 = vmatpush.msrb.mxu0 %v594_v34 }
 0x2fe   : > { %v429_v46 = vadd.f32 %v803_v36, %v428_v43 }
 0x300   : > { %v433_v49 = vsel %vm432_vm13, %v803_v36, %v429_v46  ;;  %v593_v36 = vld [vmem:[%s1156_s5 + $0x18] sm:$0xff] }
 0x301   : > { %v438_v50 = vsel %vm435_vm14, %v437_v47, %v433_v49  ;;  %622 = vmatpush.msrb.mxu0 %v593_v36 }
 0x302   : > { %v440_v53 = vrot.slane %v438_v50, 1  ;;  %v443_v56 = vmul.f32 %v438_v50, %v392_v54 }
 0x303   : > { %623 = vmatpush.msrb.mxu0 %v592_v39 }
 0x304   : > { %v444_v55 = vmul.f32 %v440_v53, %v399_v51  ;;  %v793_v53 = vld [vmem:[%s491_s25] ss:$0 sm:$0xff] }
 0x306   : > { %v457_v57 = vrot.slane %v444_v55, 7 }
 0x308   : > { %v458_v59 = vsel %vm178_vm8, %v457_v57, %v443_v56 }
 0x309   : > { %745 = vmatmul.msk.f32.vlgmr.msrb.gmra.mxu2 %vm78_vm0, %v458_v59 }
 0x38c   : > { %v478_v61 = vpop.f32.mrf.mxu2 }
 0x38d   : > { %v479_v62 = vadd.f32 %v791_v60, %v478_v61  ;;  %v591_v61 = vld [vmem:[%s1156_s5 + $0x8] sm:$0xff] }
 0x38e   : > { %624 = vmatpush.msrb.mxu0 %v591_v61 }
 0x38f   : > { %v482_v63 = vrot.slane %v479_v62, 1  ;;  %v483_v0 = vperm.slane %v479_v62, 0  ;;  %v590_v62 = vld [vmem:[%s1156_s5] sm:$0xff] }
 0x390   : > { %625 = vmatpush.msrb.mxu0 %v590_v62 }
 0x391   : > { %v484_v1 = vperm.slane %v482_v63, 0  ;;  %v487_v2 = vadd.f32 %v830_v52, %v483_v0  ;;  %v794_v63 = vld [vmem:[%s552_s26] ss:$0 sm:$0xff] }
 0x393   : > { %v493_v3 = vsel %vm78_vm0, %v487_v2, 0.0  ;;  %v488_v4 = vadd.f32 %v826_v58, %v484_v1 }
 0x394   : > { %494 = vadd.xlane.f32.xlu0 %v493_v3 }
 0x395   : > { %v496_v5 = vsel %vm78_vm0, %v488_v4, 0.0 }
 0x396   : > { %497 = vadd.xlane.f32.xlu1 %v496_v5 }
 0x407   : > { %v495_v6 = vpop.xlane.xlu0 %494 }
 0x408   : > { %v499_v7 = vmul.f32 %v495_v6, %v966_v10  ;;  %v795_v6 = vld [vmem:[%s598_s1] ss:$0 sm:$0xff] }
 0x409   : > { %v498_v8 = vpop.xlane.xlu1 %497 }
 0x40a   : > { %v1124_v9 = vsub.f32 %v487_v2, %v499_v7  ;;  %v500_v52 = vmul.f32 %v498_v8, %v966_v10 }
 0x40c   : > { %v503_v11 = vmul.f32 %v1124_v9, %v1124_v9  ;;  %v1129_v58 = vsub.f32 %v488_v4, %v500_v52 }
 0x40e   : > { %v505_v12 = vsel %vm78_vm0, %v503_v11, 0.0  ;;  %v504_v13 = vmul.f32 %v1129_v58, %v1129_v58 }
 0x40f   : > { %506 = vadd.xlane.f32.xlu1 %v505_v12 }
 0x410   : > { %v508_v14 = vsel %vm78_vm0, %v504_v13, 0.0 }
 0x411   : > { %509 = vadd.xlane.f32.xlu2 %v508_v14 }
 0x482   : > { %v507_v19 = vpop.xlane.xlu1 %506 }
 0x483   : > { %v511_v20 = vmul.f32 %v507_v19, %v966_v10 }
 0x484   : > { %v510_v21 = vpop.xlane.xlu2 %509 }
 0x485   : > { %v513_v22 = vadd.f32 1e-05, %v511_v20  ;;  %v512_v23 = vmul.f32 %v510_v21, %v966_v10 }
 0x487   : > { %804 = vrsqrt.f32 %v513_v22  ;;  %v514_v30 = vadd.f32 1e-05, %v512_v23  ;;  %vm521_vm1 = vweird.f32 %v513_v22 }
 0x489   : > { %806 = vrsqrt.f32 %v514_v30  ;;  %vm531_vm4 = vweird.f32 %v514_v30 }
 0x48d   : > { %v805_v35 = vpop.eup %804 }
 0x48e   : > { %v516_v37 = vmul.f32 %v805_v35, %v513_v22  ;;  %vm522_vm15 = vweird.f32 %v805_v35 }
 0x48f   : > { %v807_v38 = vpop.eup %806  ;;  %vm523_vm3 = vmor %vm521_vm1, %vm522_vm15 }
 0x490   : > { %v517_v40 = vmul.f32 %v805_v35, %v516_v37  ;;  %v526_v41 = vmul.f32 %v807_v38, %v514_v30  ;;  %vm532_vm2 = vweird.f32 %v807_v38 }
 0x491   : > { %vm533_vm5 = vmor %vm531_vm4, %vm532_vm2 }
 0x492   : > { %v518_v42 = vmul.f32 0.5, %v517_v40  ;;  %v527_v43 = vmul.f32 %v807_v38, %v526_v41 }
 0x494   : > { %v519_v44 = vsub.f32 1.5, %v518_v42  ;;  %v528_v45 = vmul.f32 0.5, %v527_v43 }
 0x496   : > { %v520_v46 = vmul.f32 %v805_v35, %v519_v44  ;;  %v529_v47 = vsub.f32 1.5, %v528_v45  ;;  %v796_v44 = vld [vmem:[%s635_s27] ss:$0 sm:$0xff] }
 0x498   : > { %v524_v49 = vsel %vm523_vm3, %v805_v35, %v520_v46  ;;  %v530_v50 = vmul.f32 %v807_v38, %v529_v47  ;;  %v797_v47 = vld [vmem:[%s637_s7] ss:$0 sm:$0xff] }
 0x499   : > { %v535_v51 = vmul.f32 %v524_v49, %v1124_v9 }
 0x49a   : > { %v534_v54 = vsel %vm533_vm5, %v807_v38, %v530_v50 }
 0x49b   : > { %v540_v55 = vmul.f32 %v792_v48, %v535_v51  ;;  %v536_v57 = vmul.f32 %v534_v54, %v1129_v58 }
 0x49d   : > { %v545_v56 = vadd.f32 %v793_v53, %v540_v55  ;;  %v541_v59 = vmul.f32 %v792_v48, %v536_v57 }
 0x49f   : > { %746 = vmatmul.msk.f32.vlgmr.msrb.gmra.mxu3 %vm78_vm0, %v545_v56  ;;  %v546_v60 = vadd.f32 %v793_v53, %v541_v59 }
 0x4a7   : > { %747 = vmatmul.msk.f32.gmra.mxu3 %vm78_vm0, %v546_v60 }
 0x522   : > { %v580_v0 = vpop.f32.mrf.mxu3 }
 0x523   : > { %v581_v1 = vadd.f32 %v794_v63, %v580_v0 }
 0x525   : > { %v586_v2 = vmax.f32 %v581_v1, 0.0 }
 0x527   : > { %749 = vmatmul.msk.f32.vlgmr.msrb.gmra.mxu0 %vm603_vm6, %v586_v2 }
 0x52a   : > { %v583_v3 = vpop.f32.mrf.mxu3 }
 0x52b   : > { %v584_v4 = vadd.f32 %v794_v63, %v583_v3 }
 0x52d   : > { %v587_v5 = vmax.f32 %v584_v4, 0.0 }
 0x52f   : > { %750 = vmatmul.msk.f32.gmra.mxu0 %vm603_vm6, %v587_v5 }
 0x5a4   : > { %v627_v7 = vpop.f32.mrf.mxu0 }
 0x5a5   : > { %v628_v8 = vadd.f32 %v795_v6, %v627_v7 }
 0x5a7   : > { %v633_v9 = vadd.f32 %v628_v8, %v545_v56 }
 0x5a9   : > { %v639_v52 = vsel %vm78_vm0, %v633_v9, 0.0 }
 0x5aa   : > { %640 = vadd.xlane.f32.xlu2 %v639_v52 }
 0x5ac   : > { %v630_v11 = vpop.f32.mrf.mxu0 }
 0x5ad   : > { %v631_v58 = vadd.f32 %v795_v6, %v630_v11 }
 0x5af   : > { %v634_v12 = vadd.f32 %v631_v58, %v546_v60 }
 0x5b1   : > { %v642_v13 = vsel %vm78_vm0, %v634_v12, 0.0 }
 0x5b2   : > { %643 = vadd.xlane.f32.xlu1 %v642_v13 }
 0x61d   : > { %v641_v14 = vpop.xlane.xlu2 %640 }
 0x61e   : > { %v645_v15 = vmul.f32 %v641_v14, %v966_v10 }
 0x620   : > { %v647_v16 = vsub.f32 %v633_v9, %v645_v15 }
 0x622   : > { %v649_v17 = vmul.f32 %v647_v16, %v647_v16 }
 0x624   : > { %v651_v18 = vsel %vm78_vm0, %v649_v17, 0.0 }
 0x625   : > { %v644_v19 = vpop.xlane.xlu1 %643  ;;  %652 = vadd.xlane.f32.xlu2 %v651_v18 }
 0x626   : > { %v646_v20 = vmul.f32 %v644_v19, %v966_v10 }
 0x628   : > { %v648_v21 = vsub.f32 %v634_v12, %v646_v20 }
 0x62a   : > { %v650_v22 = vmul.f32 %v648_v21, %v648_v21 }
 0x62c   : > { %v654_v23 = vsel %vm78_vm0, %v650_v22, 0.0 }
 0x62d   : > { %655 = vadd.xlane.f32.xlu1 %v654_v23 }
 0x698   : > { %v653_v30 = vpop.xlane.xlu2 %652 }
 0x699   : > { %v657_v31 = vmul.f32 %v653_v30, %v966_v10 }
 0x69b   : > { %v659_v32 = vadd.f32 1e-05, %v657_v31 }
 0x69d   : > { %808 = vrsqrt.f32 %v659_v32  ;;  %vm667_vm8 = vweird.f32 %v659_v32 }
 0x6a0   : > { %v656_v33 = vpop.xlane.xlu1 %655 }
 0x6a1   : > { %v658_v34 = vmul.f32 %v656_v33, %v966_v10 }
 0x6a3   : > { %v809_v35 = vpop.eup %808  ;;  %v660_v36 = vadd.f32 1e-05, %v658_v34 }
 0x6a4   : > { %v662_v37 = vmul.f32 %v809_v35, %v659_v32  ;;  %vm668_vm7 = vweird.f32 %v809_v35 }
 0x6a5   : > { %810 = vrsqrt.f32 %v660_v36  ;;  %vm669_vm9 = vmor %vm667_vm8, %vm668_vm7  ;;  %vm677_vm11 = vweird.f32 %v660_v36 }
 0x6a6   : > { %v663_v38 = vmul.f32 %v809_v35, %v662_v37 }
 0x6a8   : > { %v664_v39 = vmul.f32 0.5, %v663_v38 }
 0x6aa   : > { %v665_v40 = vsub.f32 1.5, %v664_v39 }
 0x6ab   : > { %v811_v41 = vpop.eup %810 }
 0x6ac   : > { %v666_v42 = vmul.f32 %v809_v35, %v665_v40  ;;  %v672_v43 = vmul.f32 %v811_v41, %v660_v36  ;;  %vm678_vm10 = vweird.f32 %v811_v41 }
 0x6ad   : > { %vm679_vm12 = vmor %vm677_vm11, %vm678_vm10 }
 0x6ae   : > { %v670_v45 = vsel %vm669_vm9, %v809_v35, %v666_v42  ;;  %v673_v46 = vmul.f32 %v811_v41, %v672_v43 }
 0x6af   : > { %v681_v48 = vmul.f32 %v670_v45, %v647_v16 }
 0x6b0   : > { %v674_v49 = vmul.f32 0.5, %v673_v46 }
 0x6b1   : > { %v686_v50 = vmul.f32 %v796_v44, %v681_v48 }
 0x6b2   : > { %v675_v51 = vsub.f32 1.5, %v674_v49 }
 0x6b3   : > { %v691_v53 = vadd.f32 %v797_v47, %v686_v50  }
 0x6b4   : > { %v676_v54 = vmul.f32 %v811_v41, %v675_v51 }
 0x6b5   : > { %v1275_v52 = vmov %v691_v53  ;;  %693 = vst.msk [vmem:[%s1251_s23] sm:$0xff] (%p158_p0), %vm78_vm0, %v691_v53 }
 0x6b6   : > { %v680_v55 = vsel %vm679_vm12, %v811_v41, %v676_v54 }
 0x6b7   : > { %v682_v56 = vmul.f32 %v680_v55, %v648_v21 }
 0x6b9   : > { %v687_v57 = vmul.f32 %v796_v44, %v682_v56  ;;  %160 = sbr.rel (!%p158_p0) target bundleno = 293 (0x125), region = 135 }
 0x6bb   : > { %v692_v59 = vadd.f32 %v797_v47, %v687_v57  }
 0x6bd   : > { %v1274_v58 = vmov %v692_v59  ;;  %694 = vst.msk [vmem:[%s1251_s23 + $0x8] sm:$0xff] (%p158_p0), %vm78_vm0, %v692_v59 }

</bundles_post_ra>
